<compile_context>
chip_gen: v7x
topology: tpu7x:2x2x1
jax: 0.10.0
libtpu: 0.0.40
codegen_flags: <defaults>
</compile_context>

<pallas_src>
import jax
import jax.numpy as jnp
from jax.experimental import pallas as pl
from jax.experimental.pallas import tpu as pltpu


def _round_up(x, m):
    return ((x + m - 1) // m) * m


def _round_down(x, m):
    return (x // m) * m


def make_grcl_unit_kernel(tm, params_resident):
    """Kernel factory. `tm` = row-tile; `params_resident` selects how the
    packed per-row BN parameters are indexed."""

    def kernel(p_ref, wgf_u_ref, wgr_x_ref, wf_u_ref, wr_x_ref, out_ref):
        if params_resident:
            # Whole (R_pad, 8) params slab is resident; slice this block's rows.
            r0 = pl.multiple_of(pl.program_id(0) * tm, tm)
            p = p_ref[pl.ds(r0, tm), :]
        else:
            p = p_ref[...]

        s_gfu = p[:, 0:1]
        s_grx = p[:, 1:2]
        b_g = p[:, 2:3]
        s_fu = p[:, 3:4]
        b_f = p[:, 4:5]
        s_rxgx = p[:, 5:6]
        b_rxgx = p[:, 6:7]
        # column 7 is padding

        # Native-dtype loads (bf16 or f32), f32 math in-register.
        a = wgf_u_ref[...].astype(jnp.float32)
        b = wgr_x_ref[...].astype(jnp.float32)
        c = wf_u_ref[...].astype(jnp.float32)
        d = wr_x_ref[...].astype(jnp.float32)

        gate = jax.nn.sigmoid(a * s_gfu + b * s_grx + b_g)
        x = c * s_fu + b_f + gate * (d * s_rxgx + b_rxgx)
        out_ref[...] = jnp.maximum(x, jnp.float32(0.0)).astype(out_ref.dtype)

    return kernel


def fold_bn(gamma, beta, mean, var, eps=1e-5):
    scale = gamma / jnp.sqrt(var + eps)
    bias = beta - mean * scale
    return scale, bias


def grcl_unit_forward(wgf_u, wgr_x, wf_u, wr_x, bn_params, eps=1e-5,
                      target_block_bytes=2 << 20, min_grid_steps=8,
                      params_resident_limit=2 << 20):
    """bn_params: dict name -> (gamma, beta, running_mean, running_var), each (C,)."""
    N, C, H, W = wgf_u.shape
    dtype = wgf_u.dtype
    R = N * C          # rows: one (n, c) pair per row
    L = H * W          # lanes: spatial

    elem_bytes = jnp.dtype(dtype).itemsize
    # Sublane tile: 8 rows for f32, 16 for bf16, 32 for int8.
    row_align = max(8, 32 // elem_bytes)
    target_elems = max(row_align * 128, int(target_block_bytes) // elem_bytes)

    # ---- Lane tiling: full spatial extent when it fits, else multiples of 128
    # (keeps stores lane-dense except at most the tail j-block).
    if L <= 128 or L * row_align <= target_elems:
        tl = L
    else:
        tl = max(128, _round_down(target_elems // row_align, 128))

    # ---- Row tiling sized for ~target_block_bytes per data block.
    tm = max(row_align, _round_down(target_elems // tl, row_align))
    if tm >= R:
        tm = R
    # Never collapse to a single grid step (v7x megacore + pipelining).
    lane_blocks = pl.cdiv(L, tl)
    if pl.cdiv(R, tm) * lane_blocks < min_grid_steps and R > row_align:
        want_row_blocks = max(2, pl.cdiv(min_grid_steps, lane_blocks))
        tm = max(row_align, _round_up(pl.cdiv(R, want_row_blocks), row_align))
        tm = min(tm, R)

    row_blocks = pl.cdiv(R, tm)
    lane_blocks = pl.cdiv(L, tl)
    grid = (row_blocks, lane_blocks)
    R_pad = row_blocks * tm

    # ---- Fold the 5 eval-mode BatchNorms and pack into one (R_pad, 8) slab.
    s_gfu, b_gfu = fold_bn(*bn_params["gfu"], eps=eps)
    s_grx, b_grx = fold_bn(*bn_params["grx"], eps=eps)
    s_fu, b_fu = fold_bn(*bn_params["fu"], eps=eps)
    s_rx, b_rx = fold_bn(*bn_params["rx"], eps=eps)
    s_gx, b_gx = fold_bn(*bn_params["gx"], eps=eps)

    params_c = jnp.stack(
        [s_gfu, s_grx, b_gfu + b_grx,
         s_fu, b_fu + b_gx,
         s_rx * s_gx, b_rx * s_gx,
         jnp.zeros_like(s_gfu)],        # pad to 8 columns
        axis=1).astype(jnp.float32)     # (C, 8)
    params = jnp.tile(params_c, (N, 1))  # row r = n*C + c -> channel c params
    if R_pad > R:
        params = jnp.pad(params, ((0, R_pad - R), (0, 0)))

    # A (rows, 8) f32 block lane-pads to 128 in VMEM -> rows * 512 bytes.
    params_resident = R_pad * 128 * 4 <= int(params_resident_limit)
    if params_resident:
        param_spec = pl.BlockSpec((R_pad, 8), lambda i, j: (0, 0))
        param_buf_bytes = 2 * R_pad * 128 * 4      # conservative (x2 buffers)
    else:
        param_spec = pl.BlockSpec((tm, 8), lambda i, j: (i, 0))
        param_buf_bytes = 2 * tm * 128 * 4

    # ---- NCHW -> (N*C, H*W): contiguous, no-copy reshape, native dtype.
    def to_slab(x):
        return x.reshape(R, L)

    slabs = [to_slab(x) for x in (wgf_u, wgr_x, wf_u, wr_x)]

    data_spec = pl.BlockSpec((tm, tl), lambda i, j: (i, j))

    # Explicit VMEM budget: 5 data streams x 2 buffers + params + headroom.
    data_block_bytes = tm * tl * elem_bytes
    vmem_bytes = 5 * 2 * data_block_bytes + param_buf_bytes + (4 << 20)
    vmem_bytes = int(min(max(vmem_bytes, 16 << 20), 64 << 20))

    out_flat = pl.pallas_call(
        make_grcl_unit_kernel(tm, params_resident),
        out_shape=jax.ShapeDtypeStruct((R, L), dtype),
        grid_spec=pltpu.PrefetchScalarGridSpec(
            num_scalar_prefetch=0,
            grid=grid,
            in_specs=[param_spec] + [data_spec] * 4,
            out_specs=data_spec,
        ),
        compiler_params=pltpu.CompilerParams(
            dimension_semantics=("parallel", "parallel"),
            vmem_limit_bytes=vmem_bytes),
    )(params, *slabs)

    return out_flat.reshape(N, C, H, W)


def grcl_unit_reference(wgf_u, wgr_x, wf_u, wr_x, bn_params, eps=1e-5):
    def bn(x, name):
        s, b = fold_bn(*bn_params[name], eps=eps)
        return x * s[None, :, None, None] + b[None, :, None, None]

    wgf_u, wgr_x, wf_u, wr_x = (x.astype(jnp.float32)
                                for x in (wgf_u, wgr_x, wf_u, wr_x))
    G = jax.nn.sigmoid(bn(wgf_u, "gfu") + bn(wgr_x, "grx"))
    x = jax.nn.relu(bn(wf_u, "fu") + bn(bn(wr_x, "rx") * G, "gx"))
    return x


def _make_bn_params(C, seed=42):
    bn_params = {}
    kp = jax.random.split(jax.random.PRNGKey(seed), 5)
    for i, name in enumerate(("gfu", "grx", "fu", "rx", "gx")):
        kg, kb, km, kv = jax.random.split(kp[i], 4)
        gamma = 1.0 + 0.1 * jax.random.normal(kg, (C,), jnp.float32)
        beta = 0.1 * jax.random.normal(kb, (C,), jnp.float32)
        mean = 0.1 * jax.random.normal(km, (C,), jnp.float32)
        var = jnp.abs(1.0 + 0.1 * jax.random.normal(kv, (C,), jnp.float32))
        bn_params[name] = (gamma, beta, mean, var)
    return bn_params


def _run_check(key, shape, dtype, atol, rtol, **fwd_kwargs):
    N, C, H, W = shape
    ks = jax.random.split(key, 4)
    ins = [jax.random.normal(k, shape, jnp.float32).astype(dtype) for k in ks]
    bn_params = _make_bn_params(C)

    out = grcl_unit_forward(*ins, bn_params, **fwd_kwargs)
    out = jax.block_until_ready(out)

    ref = grcl_unit_reference(*ins, bn_params)
    assert out.shape == shape
    assert jnp.allclose(out.astype(jnp.float32), ref, atol=atol, rtol=rtol), (
        f"mismatch for shape={shape} dtype={dtype}")


if __name__ == "__main__":
    key = jax.random.PRNGKey(0)
    k1, k2, k3 = jax.random.split(key, 3)

    # 1) f32, lane-dense spatial (H*W = 128), multi-step row grid.
    _run_check(k1, (2, 32, 8, 16), jnp.float32, atol=1e-5, rtol=1e-5)

    # 2) bf16 I/O (native-dtype streaming, f32 math in-register), H*W not a
    #    multiple of 128 (full-extent lane block).
    _run_check(k2, (2, 16, 10, 12), jnp.bfloat16, atol=2e-2, rtol=2e-2)

    # 3) f32 with a tiny block budget to exercise the 2-D (row, lane) split
    #    and partial tail blocks.
    _run_check(k3, (2, 8, 16, 32), jnp.float32, atol=1e-5, rtol=1e-5,
               target_block_bytes=8 * 1024)

    print("KERNEL_OK")
</pallas_src>

<mosaic_0001>
module attributes {stable_mosaic.version = 11 : i64} {
  func.func @kernel(%arg0: i32, %arg1: i32, %arg2: memref<64x8xf32, #tpu.memory_space<vmem>>, %arg3: memref<8x128xf32, #tpu.memory_space<vmem>>, %arg4: memref<8x128xf32, #tpu.memory_space<vmem>>, %arg5: memref<8x128xf32, #tpu.memory_space<vmem>>, %arg6: memref<8x128xf32, #tpu.memory_space<vmem>>, %arg7: memref<8x128xf32, #tpu.memory_space<vmem>>) attributes {dimension_semantics = [#tpu.dimension_semantics<parallel>, #tpu.dimension_semantics<parallel>], iteration_bounds = array<i64: 8, 1>, scalar_prefetch = 0 : i64, scratch_operands = 0 : i64, tpu.core_type = #tpu.core_type<tc>, window_params = [{pipeline_mode = #tpu.pipeline_mode<synchronous>, transform_indices = @transform_0, window_bounds = array<i64: 64, 8>}, {transform_indices = @transform_1, window_bounds = array<i64: 8, 128>}, {transform_indices = @transform_2, window_bounds = array<i64: 8, 128>}, {transform_indices = @transform_3, window_bounds = array<i64: 8, 128>}, {transform_indices = @transform_4, window_bounds = array<i64: 8, 128>}, {transform_indices = @transform_5, window_bounds = array<i64: 8, 128>}]} {
    %c8_i32 = arith.constant 8 : i32
    %0 = arith.muli %arg0, %c8_i32 : i32
    %1 = tpu.assume_multiple %0, 8 : i32
    %2 = arith.index_cast %1 : i32 to index
    %c0 = arith.constant 0 : index
    %3 = vector.load %arg2[%2, %c0] : memref<64x8xf32, #tpu.memory_space<vmem>>, vector<8x8xf32>
    %4 = vector.extract_strided_slice %3 {offsets = [0, 0], sizes = [8, 1], strides = [1, 1]} : vector<8x8xf32> to vector<8x1xf32>
    %5 = vector.extract_strided_slice %3 {offsets = [0, 1], sizes = [8, 1], strides = [1, 1]} : vector<8x8xf32> to vector<8x1xf32>
    %6 = vector.extract_strided_slice %3 {offsets = [0, 2], sizes = [8, 1], strides = [1, 1]} : vector<8x8xf32> to vector<8x1xf32>
    %7 = vector.extract_strided_slice %3 {offsets = [0, 3], sizes = [8, 1], strides = [1, 1]} : vector<8x8xf32> to vector<8x1xf32>
    %8 = vector.extract_strided_slice %3 {offsets = [0, 4], sizes = [8, 1], strides = [1, 1]} : vector<8x8xf32> to vector<8x1xf32>
    %9 = vector.extract_strided_slice %3 {offsets = [0, 5], sizes = [8, 1], strides = [1, 1]} : vector<8x8xf32> to vector<8x1xf32>
    %10 = vector.extract_strided_slice %3 {offsets = [0, 6], sizes = [8, 1], strides = [1, 1]} : vector<8x8xf32> to vector<8x1xf32>
    %c0_0 = arith.constant 0 : index
    %c0_1 = arith.constant 0 : index
    %11 = vector.load %arg3[%c0_0, %c0_1] : memref<8x128xf32, #tpu.memory_space<vmem>>, vector<8x128xf32>
    %c0_2 = arith.constant 0 : index
    %c0_3 = arith.constant 0 : index
    %12 = vector.load %arg4[%c0_2, %c0_3] : memref<8x128xf32, #tpu.memory_space<vmem>>, vector<8x128xf32>
    %c0_4 = arith.constant 0 : index
    %c0_5 = arith.constant 0 : index
    %13 = vector.load %arg5[%c0_4, %c0_5] : memref<8x128xf32, #tpu.memory_space<vmem>>, vector<8x128xf32>
    %c0_6 = arith.constant 0 : index
    %c0_7 = arith.constant 0 : index
    %14 = vector.load %arg6[%c0_6, %c0_7] : memref<8x128xf32, #tpu.memory_space<vmem>>, vector<8x128xf32>
    %15 = vector.broadcast %4 : vector<8x1xf32> to vector<8x128xf32>
    %16 = arith.mulf %11, %15 : vector<8x128xf32>
    %17 = vector.broadcast %5 : vector<8x1xf32> to vector<8x128xf32>
    %18 = arith.mulf %12, %17 : vector<8x128xf32>
    %19 = arith.addf %16, %18 : vector<8x128xf32>
    %20 = vector.broadcast %6 : vector<8x1xf32> to vector<8x128xf32>
    %21 = arith.addf %19, %20 : vector<8x128xf32>
    %22 = arith.negf %21 : vector<8x128xf32>
    %23 = math.exp %22 : vector<8x128xf32>
    %cst = arith.constant 1.000000e+00 : f32
    %24 = vector.broadcast %cst : f32 to vector<8x128xf32>
    %25 = arith.addf %24, %23 : vector<8x128xf32>
    %26 = arith.divf %24, %25 : vector<8x128xf32>
    %27 = vector.broadcast %7 : vector<8x1xf32> to vector<8x128xf32>
    %28 = arith.mulf %13, %27 : vector<8x128xf32>
    %29 = vector.broadcast %8 : vector<8x1xf32> to vector<8x128xf32>
    %30 = arith.addf %28, %29 : vector<8x128xf32>
    %31 = vector.broadcast %9 : vector<8x1xf32> to vector<8x128xf32>
    %32 = arith.mulf %14, %31 : vector<8x128xf32>
    %33 = vector.broadcast %10 : vector<8x1xf32> to vector<8x128xf32>
    %34 = arith.addf %32, %33 : vector<8x128xf32>
    %35 = arith.mulf %26, %34 : vector<8x128xf32>
    %36 = arith.addf %30, %35 : vector<8x128xf32>
    %cst_8 = arith.constant 0.000000e+00 : f32
    %37 = vector.broadcast %cst_8 : f32 to vector<8x128xf32>
    %38 = arith.maximumf %36, %37 : vector<8x128xf32>
    %c0_9 = arith.constant 0 : index
    %c0_10 = arith.constant 0 : index
    %39 = vector.load %arg7[%c0_9, %c0_10] : memref<8x128xf32, #tpu.memory_space<vmem>>, vector<8x128xf32>
    tpu.vector_store %arg7[%c0_9, %c0_10], %38 {strides = array<i32>} : memref<8x128xf32, #tpu.memory_space<vmem>>, vector<8x128xf32>,
    return
  }
  func.func @transform_0(%arg0: i32, %arg1: i32) -> (i32, i32) {
    %c0_i32 = arith.constant 0 : i32
    %c0_i32_0 = arith.constant 0 : i32
    %c0_i32_1 = arith.constant 0 : i32
    return %c0_i32, %c0_i32_0 : i32, i32
  }
  func.func @transform_1(%arg0: i32, %arg1: i32) -> (i32, i32) {
    %c0_i32 = arith.constant 0 : i32
    return %arg0, %arg1 : i32, i32
  }
  func.func @transform_2(%arg0: i32, %arg1: i32) -> (i32, i32) {
    %c0_i32 = arith.constant 0 : i32
    return %arg0, %arg1 : i32, i32
  }
  func.func @transform_3(%arg0: i32, %arg1: i32) -> (i32, i32) {
    %c0_i32 = arith.constant 0 : i32
    return %arg0, %arg1 : i32, i32
  }
  func.func @transform_4(%arg0: i32, %arg1: i32) -> (i32, i32) {
    %c0_i32 = arith.constant 0 : i32
    return %arg0, %arg1 : i32, i32
  }
  func.func @transform_5(%arg0: i32, %arg1: i32) -> (i32, i32) {
    %c0_i32 = arith.constant 0 : i32
    return %arg0, %arg1 : i32, i32
  }
}

</mosaic_0001>

<bundles_post_ra>
// kernel: tpu_custom_call.1
= control target key start
LH: loop header
LB: loop body
LE: loop exit
PB: predicated region body
PF: predicated region fallthrough
CT: control target
= control target key end

     0   :  { %s1179_s0 = inlined_call_operand.vmem [shape: f32[64,8], index: 0, kind: input, shape index: {}]   ;;  %s1180_s1 = inlined_call_operand.vmem [shape: f32[64,128], index: 1, kind: input, shape index: {}]   ;;  %s1181_s2 = inlined_call_operand.hbm [shape: f32[64,128], index: 2, kind: input, shape index: {}]   ;;  %s1182_s3 = inlined_call_operand.hbm [shape: f32[64,128], index: 3, kind: input, shape index: {}]   ;;  %s1183_s4 = inlined_call_operand.hbm [shape: f32[64,128], index: 4, kind: input, shape index: {}]   ;;  %s1184_s5 = inlined_call_operand.hbm [shape: f32[64,128], index: 5, kind: output, shape index: {}]  }
   0x1   :  { %1193 = sst [smem:[#allocation17_spill]] %s1182_s3 }
   0x2   :  { %10 = vsyncpa [#allocation3], 0 }
   0x3   :  { %12 = vsyncpa [#allocation3 + $0x1], 0 }
   0x4   :  { %13 = vsyncpa [#allocation6], 0 }
   0x5   :  { %15 = vsyncpa [#allocation6 + $0x1], 0 }
   0x6   :  { %16 = vsyncpa [#allocation4], 0 }
   0x7   :  { %18 = vsyncpa [#allocation4 + $0x1], 0  ;;  %s904_s18 = smov 0   ;;  %s906_s19 = smov 0  }
   0x8   :  { %s908_s20 = smov 0   ;;  %s910_s21 = smov 0  }
   0x9   :  { %s912_s22 = smov 0   ;;  %s914_s23 = smov 0  }
   0xa LB: > { %1194 = sst [smem:[#allocation12_spill]] %s841_s18  ;;  %s935_s24 = sadd.s32 4294967295, %s861_s23   ;;  %s861_s23 = sphi %s914_s23, %s24_s23   ;;  %s857_s22 = sphi %s912_s22, %s1219_s22   ;;  %s853_s21 = sphi %s910_s21, %s1218_s21   ;;  %s849_s20 = sphi %s908_s20, %s1222_s20   ;;  %s845_s19 = sphi %s906_s19, %s1221_s19   ;;  %s841_s18 = sphi %s904_s18, %s1220_s18  }
   0xb   : > { %1195 = sst [smem:[#allocation13_spill]] %s857_s22  ;;  %s574_s25 = sadd.s32 4294967294, %s861_s23  }
   0xc   : > { %s36_s26 = sadd.s32 1, %s857_s22  ;;  %s94_s27 = sadd.s32 1, %s849_s20 }
   0xd   : > { %p38_p0 = scmp.ge.s32.totalorder %s36_s26, 8  ;;  %p101_p1 = scmp.ne.s32.totalorder %s849_s20, %s845_s19 }
   0xe   : > { %p102_p2 = scmp.eq.s32.totalorder %s861_s23, 0  ;;  %p107_p3 = scmp.ne.s32.totalorder %s845_s19, %s841_s18 }
   0xf   : > { %s1224_s26 = smov (%p38_p0, %s36_s26), 0  ;;  %p108_p5 = scmp.eq.s32.totalorder %s935_s24, 0 }
  0x10   : > { %1196 = sst [smem:[#allocation14_spill]] %s1224_s26  ;;  %p947_p4 = por %p102_p2, %p101_p1 }
  0x11   : > { %s89_s29 = ssub.s32 %s857_s22, %s1224_s26  ;;  %p189_p6 = scmp.eq.s32.totalorder %s935_s24, 7 }
  0x12   : > { %p92_p7 = scmp.eq.s32.totalorder %s89_s29, 0  ;;  %p955_p8 = por %p108_p5, %p107_p3 }
  0x13   : > { %p959_p9 = por %p189_p6, %p101_p1  ;;  %p195_p10 = scmp.eq.s32.totalorder %s574_s25, 7 }
  0x14   : > { %s1198_s30 = scalar_select %p955_p8, 1, 0 }
  0x15   : > { %s1199_s6 = scalar_select %p959_p9, 1, 0 }
  0x16   : > { %s964_s7 = scalar_select %p92_p7, %s849_s20, %s94_s27  }
  0x17   : > { %p966_p11 = por %p195_p10, %p107_p3  ;;  %p617_p12 = scmp.lt.s32.totalorder %s861_s23, 8 }
  0x18   : > { %1200 = sst [smem:[#allocation15_spill]] %s964_s7  ;;  %s1185_s9 = sand.u32 1, %s849_s20  }
  0x19   : > { %s1201_s8 = scalar_select %p966_p11, 1, 0 }
  0x1a   : > { %s974_s10 = sshll.u32 %s1185_s9, 3  ;;  %s977_s11 = sshll.u32 %s857_s22, 7 }
  0x1b   : > { %1202 = sst [smem:[#allocation16_spill]] %s1201_s8  ;;  %p981_p13 = pnand %p617_p12, %p947_p4 }
  0x1c   : > { %s247_s13 = sand.u32 1, %s861_s23   ;;  %s1204_s3 = sld [smem:[#allocation17_spill]] }
  0x1d   : > { %s1203_s12 = scalar_select %p981_p13, 1, 0 }
  0x1e   : > { %s251_s17 = scalar_lea.vmem [#allocation5], %s974_s10  ;;  %s997_s27 = scalar_lea.sflag [#allocation6], %s247_s13 }
  0x1f   : > { %s259_s25 = sshll.u32 %s251_s17, 4  ;;  %p1003_p3 = pneg %p981_p13  ;;  %s994_s25 = int_to_ptr.vmem [resolvable:$true] %s259_s25 }
  0x22   : > { %s990_s16 = scalar_lea.hbm %s1204_s3, %s977_s11  ;;  %s690_s17 = scalar_lea.hbm %s1204_s3, 1024 }
  0x23   : > { %s685_s28 = scalar_lea.hbm %s990_s16, 128  ;;  %p691_p6 = scmp.lt.u32.totalorder %s990_s16, %s1204_s3 }
  0x24   : > { %p686_p2 = scmp.ne.s32.totalorder %s990_s16, %s685_s28  ;;  %p692_p7 = scmp.lt.u32.totalorder %s690_s17, %s685_s28 }
  0x25   : > { %p694_p12 = scmp.lt.u32.totalorder %s685_s28, %s990_s16 }
  0x26   : > { %p688_p4 = pnand %p1003_p3, %p686_p2  ;;  %p693_p10 = por %p692_p7, %p691_p6 }
  0x28   : > { %p689_p5 = pneg %p688_p4  ;;  %p695_p0 = por %p694_p12, %p693_p10 }
  0x2a   : > { %p696_p1 = pnand %p695_p0, %p689_p5 }
  0x2c   : > { %699 = shalt.err (!%p696_p1)
}
  0x2d   : > { %s700_s13 = scalar_lea.vmem %s994_s25, 128  ;;  %s863_s14 = smov [#allocation5]  }
  0x2e   : > { %p701_p2 = scmp.ne.s32.totalorder %s994_s25, %s700_s13  ;;  %s705_s15 = sshll.u32 %s863_s14, 4  ;;  %s706_s15 = int_to_ptr.vmem [resolvable:$false] %s705_s15 }
  0x2f   : > { %s707_s26 = scalar_lea.vmem %s706_s15, 256  ;;  %p708_p9 = scmp.lt.s32.totalorder %s994_s25, %s706_s15 }
  0x30   : > { %p703_p4 = pnand %p701_p2, %p1003_p3  ;;  %p709_p8 = scmp.lt.s32.totalorder %s707_s26, %s700_s13 }
  0x32   : > { %p704_p11 = pneg %p703_p4  ;;  %p710_p6 = por %p709_p8, %p708_p9 }
  0x34   : > { %p711_p7 = pnand %p710_p6, %p704_p11 }
  0x36   : > { %714 = shalt.err (!%p711_p7)
}
  0x37   : > { %609 = dma.hbm_to_vmem [thread:$0]  (!%p981_p13), %s990_s16, 128, %s994_s25, %s997_s27  }
  0x38   : > { %p1206_p0 = scmp.lt.s32.totalorder %s861_s23, 9  ;;  %p1207_p1 = scmp.ge.s32.totalorder %s861_s23, 1 }
  0x39   : > { %s1039_s13 = scalar_lea.hbm %s1181_s2, %s977_s11  ;;  %s232_s14 = scalar_lea.vmem [#allocation2], %s974_s10 }
  0x3a   : > { %p1031_p5 = pnand %p1207_p1, %p1206_p0  ;;  %s240_s15 = sshll.u32 %s232_s14, 4  ;;  %s1042_s15 = int_to_ptr.vmem [resolvable:$true] %s240_s15 }
  0x3b   : > { %s1048_s26 = scalar_lea.hbm %s1183_s4, %s977_s11  ;;  %s1209_s3 = sand.u32 1, %s849_s20  }
  0x3c   : > { %s1208_s9 = scalar_select %p1031_p5, 1, 0 }
  0x3d   : > { %s229_s22 = scalar_lea.sflag [#allocation3], %s1209_s3  ;;  %s715_s7 = scalar_lea.hbm %s1039_s13, 128 }
  0x3e   : > { %p716_p8 = scmp.ne.s32.totalorder %s1039_s13, %s715_s7  ;;  %s720_s8 = scalar_lea.hbm %s1181_s2, 1024 }
  0x3f   : > { %p721_p10 = scmp.lt.u32.totalorder %s1039_s13, %s1181_s2  ;;  %p722_p12 = scmp.lt.u32.totalorder %s720_s8, %s715_s7 }
  0x40   : > { %p718_p9 = pnand %p716_p8, %p1003_p3  ;;  %p724_p4 = scmp.lt.u32.totalorder %s715_s7, %s1039_s13 }
  0x41   : > { %p723_p2 = por %p722_p12, %p721_p10 }
  0x42   : > { %p719_p11 = pneg %p718_p9 }
  0x43   : > { %p725_p6 = por %p724_p4, %p723_p2 }
  0x45   : > { %p726_p7 = pnand %p725_p6, %p719_p11 }
  0x47   : > { %729 = shalt.err (!%p726_p7)
}
  0x48   : > { %s730_s3 = scalar_lea.vmem %s1042_s15, 128  ;;  %s864_s11 = smov [#allocation2]  }
  0x49   : > { %p731_p0 = scmp.ne.s32.totalorder %s1042_s15, %s730_s3  ;;  %s735_s16 = sshll.u32 %s864_s11, 4  ;;  %s736_s16 = int_to_ptr.vmem [resolvable:$false] %s735_s16 }
  0x4a   : > { %s737_s18 = scalar_lea.vmem %s736_s16, 256  ;;  %p738_p9 = scmp.lt.s32.totalorder %s1042_s15, %s736_s16 }
  0x4b   : > { %p733_p1 = pnand %p731_p0, %p1003_p3  ;;  %p739_p5 = scmp.lt.s32.totalorder %s737_s18, %s730_s3 }
  0x4d   : > { %p734_p8 = pneg %p733_p1  ;;  %p740_p10 = por %p739_p5, %p738_p9 }
  0x4f   : > { %p741_p12 = pnand %p740_p10, %p734_p8 }
  0x51   : > { %744 = shalt.err (!%p741_p12)
}
  0x52   : > { %606 = dma.hbm_to_vmem [thread:$0]  (!%p981_p13), %s1039_s13, 128, %s1042_s15, %s229_s22  }
  0x53   : > { %s270_s7 = scalar_lea.vmem [#allocation7], %s974_s10  ;;  %s745_s25 = scalar_lea.hbm %s1048_s26, 128 }
  0x54   : > { %s278_s8 = sshll.u32 %s270_s7, 4  ;;  %p746_p11 = scmp.ne.s32.totalorder %s1048_s26, %s745_s25  ;;  %s279_s8 = int_to_ptr.vmem [resolvable:$true] %s278_s8 }
  0x55   : > { %s750_s14 = scalar_lea.hbm %s1183_s4, 1024  ;;  %p751_p4 = scmp.lt.u32.totalorder %s1048_s26, %s1183_s4 }
  0x56   : > { %p748_p5 = pnand %p746_p11, %p1003_p3  ;;  %p752_p6 = scmp.lt.u32.totalorder %s750_s14, %s745_s25 }
  0x57   : > { %p754_p0 = scmp.lt.u32.totalorder %s745_s25, %s1048_s26 }
  0x58   : > { %p749_p2 = pneg %p748_p5  ;;  %p753_p7 = por %p752_p6, %p751_p4 }
  0x5a   : > { %p755_p1 = por %p754_p0, %p753_p7 }
  0x5c   : > { %p756_p8 = pnand %p755_p1, %p749_p2 }
  0x5e   : > { %759 = shalt.err (!%p756_p8)
}
  0x5f   : > { %s760_s22 = scalar_lea.vmem %s279_s8, 128  ;;  %s865_s10 = smov [#allocation7]  }
  0x60   : > { %p761_p9 = scmp.ne.s32.totalorder %s279_s8, %s760_s22  ;;  %s765_s13 = sshll.u32 %s865_s10, 4  ;;  %s766_s13 = int_to_ptr.vmem [resolvable:$false] %s765_s13 }
  0x61   : > { %s767_s15 = scalar_lea.vmem %s766_s13, 256  ;;  %p768_p11 = scmp.lt.s32.totalorder %s279_s8, %s766_s13 }
  0x62   : > { %p763_p10 = pnand %p761_p9, %p1003_p3  ;;  %p769_p5 = scmp.lt.s32.totalorder %s767_s15, %s760_s22 }
  0x64   : > { %p764_p12 = pneg %p763_p10  ;;  %p770_p13 = por %p769_p5, %p768_p11 }
  0x66   : > { %p771_p4 = pnand %p770_p13, %p764_p12 }
  0x68   : > { %774 = shalt.err (!%p771_p4)
}
  0x69   : > { %p1210_p6 = scmp.ne.s32.totalorder %s1203_s12, 0  ;;  %p1211_p2 = scmp.ne.s32.totalorder %s1208_s9, 0 }
  0x6a   : > { %s1095_s29 = sand.u32 (!%p1211_p2), 1, %s845_s19   ;;  %p1212_p13 = scmp.ne.s32.totalorder (!%p1211_p2), %s1198_s30, 0 }
  0x6b   : > { %612 = dma.hbm_to_vmem [thread:$0]  (!%p1210_p6), %s1048_s26, 128, %s279_s8, %s997_s27  }
  0x6c   : > { %287 = sbr.rel (%p1211_p2) target bundleno = 307 (0x133), region = 40  ;;  %s1098_s16 = sshll.u32 (!%p1211_p2), %s1095_s29, 3 }
  0x6d   : > { %s290_s18 = scalar_lea.sflag (!%p1211_p2), [#allocation3], %s1095_s29  ;;  %s293_s7 = scalar_lea.vmem (!%p1211_p2), [#allocation2], %s1098_s16 }
  0x73   : > { %828 = dma.done.wait (%p1212_p13), %s290_s18, 128  }
  0x74   : > { %830 = vsyncadd (%p1212_p13), %s290_s18, 4294967168  ;;  %s298_s12 = sand.u32 1, %s935_s24   ;;  %s302_s9 = scalar_lea.vmem [#allocation5], %s1098_s16 }
  0x75   : > { %s299_s27 = scalar_lea.sflag [#allocation6], %s298_s12 }
  0x76   : > { %832 = dma.done.wait (%p1212_p13), %s299_s27, 256  }
  0x77   : > { %834 = vsyncadd (%p1212_p13), %s299_s27, 4294967040  ;;  %v866_v0 = vmov 0   ;;  %s589_s26 = sshll.u32 %s853_s21, 3  ;;  %v867_v1 = vmov 2   ;;  %v868_v3 = vmov 1   ;;  %v869_v4 = vmov 5  }
  0x78   : > { %674 = vset.pattern.permute.xlu0 %v866_v0  ;;  %676 = vset.pattern.permute.xlu1 %v867_v1  ;;  %s363_s28 = scalar_lea.vmem %s1179_s0, %s589_s26  ;;  %v870_v5 = vmov 3   ;;  %v871_v6 = vmov 6   ;;  %v872_v7 = vmov 4   ;;  %p355_p3 = scmp.lt.s32.totalorder %s853_s21, 7  ;;  %v366_v10 = vld [vmem:[%s293_s7] sm:$0xff]  ;;  %v367_v23 = vld [vmem:[%s302_s9] sm:$0xff] }
  0x79   : > { %v364_v2 = vld [vmem:[%s363_s28] sm:$0xff]  ;;  %s311_s11 = scalar_lea.vmem [#allocation7], %s1098_s16  ;;  %s592_s22 = sshll.u32 %s853_s21, 7 }
  0x7a   : > { %371 = vperm.xlu0 %674, %v364_v2   ;;  %382 = vperm.xlu1 %676, %v364_v2   ;;  %s356_s24 = scalar_select %p355_p3, %s853_s21, 7  ;;  %v368_v21 = vld [vmem:[%s311_s11] sm:$0xff] }
  0x7b   : > { %s354_s10 = scalar_lea.vmem [#allocation8], %s1098_s16  ;;  %s1131_s7 = scalar_lea.hbm %s1184_s5, %s592_s22 }
  0x7c   : > { %s588_s30 = sshll.u32 %s356_s24, 3  ;;  %s431_s13 = sshll.u32 %s354_s10, 4  ;;  %s1133_s13 = int_to_ptr.vmem [resolvable:$true] %s431_s13 }
  0x7d   : > { %s361_s3 = scalar_lea.vmem %s1180_s1, %s588_s30  ;;  %s417_s12 = scalar_lea.sflag [#allocation4], %s1095_s29 }
  0x7e   : > { %675 = vset.pattern.permute.xlu0 %v868_v3  ;;  %677 = vset.pattern.permute.xlu1 %v869_v4  ;;  %v365_v9 = vld [vmem:[%s361_s3] sm:$0xff]  ;;  %s775_s27 = scalar_lea.vmem %s1133_s13, 128  ;;  %p1213_p0 = scmp.ne.s32.totalorder %s1199_s6, 0 }
  0x7f   : > { %376 = vperm.xlu0 %675, %v364_v2   ;;  %403 = vperm.xlu1 %677, %v364_v2   ;;  %p776_p7 = scmp.ne.s32.totalorder %s1133_s13, %s775_s27  ;;  %s873_s21 = smov [#allocation8]  }
  0x80   : > { %s779_s16 = sshll.u32 %s873_s21, 4  ;;  %s780_s16 = int_to_ptr.vmem [resolvable:$false] %s779_s16 }
  0x81   : > { %p777_p1 = pnand %p776_p7, %p1213_p0  ;;  %s781_s9 = scalar_lea.vmem %s780_s16, 256 }
  0x82   : > { %p782_p9 = scmp.lt.s32.totalorder %s1133_s13, %s780_s16  ;;  %p783_p10 = scmp.lt.s32.totalorder %s781_s9, %s775_s27 }
  0x83   : > { %678 = vset.pattern.permute.xlu1 %v870_v5  ;;  %679 = vset.pattern.permute.xlu0 %v871_v6  ;;  %p778_p8 = pneg %p777_p1 }
  0x84   : > { %393 = vperm.xlu1 %678, %v364_v2   ;;  %408 = vperm.xlu0 %679, %v364_v2   ;;  %p784_p12 = por %p783_p10, %p782_p9 }
  0x86   : > { %p785_p11 = pnand %p784_p12, %p778_p8 }
  0x88   : > { %680 = vset.pattern.permute.xlu1 %v872_v7 }
  0x89   : > { %398 = vperm.xlu1 %680, %v364_v2  }
  0xf9   : > { %v372_v8 = vpop.permute.xlu0 %371  ;;  %v383_v14 = vpop.permute.xlu1 %382 }
  0xfa   : > { %v374_v12 = vmul.f32 %v372_v8, %v365_v9 }
  0xfe   : > { %v377_v11 = vpop.permute.xlu0 %376  ;;  %v404_v18 = vpop.permute.xlu1 %403 }
  0xff   : > { %v379_v13 = vmul.f32 %v377_v11, %v366_v10  ;;  %v406_v24 = vmul.f32 %v404_v18, %v368_v21 }
 0x101   : > { %v380_v15 = vadd.f32 %v379_v13, %v374_v12 }
 0x103   : > { %v385_v16 = vadd.f32 %v383_v14, %v380_v15  ;;  %v394_v22 = vpop.permute.xlu1 %393  ;;  %v409_v25 = vpop.permute.xlu0 %408 }
 0x104   : > { %v396_v26 = vmul.f32 %v394_v22, %v367_v23  ;;  %v411_v28 = vadd.f32 %v409_v25, %v406_v24 }
 0x105   : > { %v590_v17 = vmul.f32 -1.442695, %v385_v16 }
 0x107   : > { %681 = vpow2.f32 %v590_v17 }
 0x108   : > { %v399_v27 = vpop.permute.xlu1 %398 }
 0x109   : > { %v401_v31 = vadd.f32 %v399_v27, %v396_v26 }
 0x111   : > { %v682_v19 = vpop.eup %681 }
 0x112   : > { %v389_v20 = vadd.f32 1.0, %v682_v19 }
 0x114   : > { %683 = vrcp.f32 %v389_v20 }
 0x11e   : > { %v684_v29 = vpop.eup %683 }
 0x11f   : > { %v412_v30 = vmul.f32 %v684_v29, %v411_v28 }
 0x121   : > { %v413_v32 = vadd.f32 %v412_v30, %v401_v31 }
 0x123   : > { %v414_v33 = vmax.f32 %v413_v32, 0.0 }
 0x125   : > { %415 = vst [vmem:[%s354_s10] sm:$0xff] %v414_v33 }
 0x126   : > { %788 = shalt.err (!%p785_p11)
}
 0x127   : > { %s789_s29 = scalar_lea.hbm %s1131_s7, 128  ;;  %s793_s25 = scalar_lea.hbm %s1184_s5, 1024 }
 0x128   : > { %p790_p5 = scmp.ne.s32.totalorder %s1131_s7, %s789_s29  ;;  %p794_p2 = scmp.lt.u32.totalorder %s1131_s7, %s1184_s5 }
 0x129   : > { %p795_p13 = scmp.lt.u32.totalorder %s793_s25, %s789_s29  ;;  %p797_p7 = scmp.lt.u32.totalorder %s789_s29, %s1131_s7 }
 0x12a   : > { %p791_p4 = pnand %p790_p5, %p1213_p0 }
 0x12b   : > { %p796_p3 = por %p795_p13, %p794_p2 }
 0x12c   : > { %p792_p6 = pneg %p791_p4 }
 0x12d   : > { %p798_p1 = por %p797_p7, %p796_p3 }
 0x12f   : > { %p799_p8 = pnand %p798_p1, %p792_p6 }
 0x131   : > { %802 = shalt.err (!%p799_p8)
}
 0x132   : > { %601 = dma.vmem_to_hbm [thread:$0]  (%p1213_p0), %s1133_s13, 128, %s1131_s7, %s417_s12  }
 0x133 PF: > { %s1214_s30 = sld [smem:[#allocation12_spill]]  ;;  %s1215_s17 = sld [smem:[#allocation16_spill]] }
 0x134   : > { %p618_p9 = scmp.ge.s32.totalorder %s861_s23, 2 }
 0x139   : > { %s443_s14 = sand.u32 1, %s1214_s30   ;;  %p1216_p10 = scmp.ne.s32.totalorder %s1215_s17, 0 }
 0x13a   : > { %s444_s3 = scalar_lea.sflag [#allocation4], %s443_s14 }
 0x13b   : > { %p614_p12 = pnand %p618_p9, %p1216_p10 }
 0x13d   : > { %836 = dma.done.wait (!%p614_p12), %s444_s3, 128  }
 0x13e   : > { %838 = vsyncadd (!%p614_p12), %s444_s3, 4294967168  ;;  %s24_s23 = sadd.s32 1, %s861_s23   ;;  %s1217_s6 = sld [smem:[#allocation15_spill]] }
 0x13f   : > { %p21_p11 = scmp.ge.s32.totalorder %s24_s23, 10   ;;  %s1218_s21 = sld [smem:[#allocation13_spill]] }
 0x140   : > { %s1219_s22 = sld [smem:[#allocation14_spill]]  ;;  %s1220_s18 = smov %s845_s19 }
 0x141   : > { %s1221_s19 = smov %s849_s20  ;;  %23 = sbr.rel (!%p21_p11) target bundleno = 10 (0xa), region = 113 }
 0x144   : > { %s1222_s20 = smov %s1217_s6 }
 0x148   :  { %449 = vsyncpa [#allocation3], 1 }
 0x149   :  { %451 = vsyncpa [#allocation3 + $0x1], 1 }
 0x14a   :  { %452 = vsyncpa [#allocation6], 1 }
 0x14b   :  { %454 = vsyncpa [#allocation6 + $0x1], 1 }
 0x14c   :  { %455 = vsyncpa [#allocation4], 1 }
 0x14d   :  { %457 = vsyncpa [#allocation4 + $0x1], 1 }

</bundles_post_ra>
